<compile_context>
chip_gen: v5e
topology: v5e:2x2
jax: 0.10.0
libtpu: 0.0.40
codegen_flags: <defaults>
</compile_context>

<pallas_src>
import functools

import jax
import jax.numpy as jnp
from jax import lax
from jax.experimental import pallas as pl
from jax.experimental.pallas import tpu as pltpu


# --------------------------------------------------------------------------- #
# Kernels
# --------------------------------------------------------------------------- #
def ca_kernel(x_ref, w1t_ref, w2t_ref, o_ref, *, inv_hw):
    """Single-pass: pool + MLP + scale for a (b_tile, C, HW) batch tile."""
    x = x_ref[...]                                                  # (b, C, HW)
    # f32 accumulation without materializing an f32 copy of the tile.
    pooled = jnp.sum(x, axis=-1, dtype=jnp.float32) * inv_hw        # (b, C)
    h = jnp.dot(pooled, w1t_ref[...], preferred_element_type=jnp.float32)
    h = jnp.maximum(h, 0.0)                                         # (b, Cr)
    s = jnp.dot(h, w2t_ref[...], preferred_element_type=jnp.float32)
    s = jax.nn.sigmoid(s)                                           # (b, C)
    # Multiply in f32, single cast on the store.
    o_ref[...] = (x.astype(jnp.float32) * s[:, :, None]).astype(o_ref.dtype)


def pool_kernel(x_ref, sum_ref, *, hw, hw_tile):
    """Two-pass / pass 1: accumulate per-channel sums over HW tiles."""
    t = pl.program_id(1)
    x = x_ref[...]                                                  # (1, C, hw_tile)
    if hw % hw_tile != 0:
        # Last HW tile is ragged: out-of-bounds lanes hold unspecified values.
        lane = lax.broadcasted_iota(jnp.int32, x.shape, 2)
        valid = (lane + t * hw_tile) < hw
        x = jnp.where(valid, x, jnp.zeros((), x.dtype))
    part = jnp.sum(x, axis=-1, dtype=jnp.float32)                   # (1, C)

    @pl.when(t == 0)
    def _():
        sum_ref[...] = jnp.zeros_like(sum_ref)

    sum_ref[...] += part[:, None, :]                                # (1, 1, C)


def scale_kernel(pooled_ref, w1t_ref, w2t_ref, x_ref, o_ref, *, inv_hw):
    """Two-pass / pass 2: recompute the tiny MLP and scale one HW tile."""
    x = x_ref[...]                                                  # (1, C, hw_tile)
    mean = pooled_ref[...][:, 0, :] * inv_hw                        # (1, C) f32
    h = jnp.maximum(
        jnp.dot(mean, w1t_ref[...], preferred_element_type=jnp.float32), 0.0)
    s = jax.nn.sigmoid(
        jnp.dot(h, w2t_ref[...], preferred_element_type=jnp.float32))  # (1, C)
    o_ref[...] = (x.astype(jnp.float32) * s[:, :, None]).astype(o_ref.dtype)


# --------------------------------------------------------------------------- #
# Wrapper
# --------------------------------------------------------------------------- #
def _vmem_physical_bytes():
    try:
        info = pltpu.get_tpu_info()
        for attr in ("vmem_capacity_bytes", "vmem_bytes", "vmem_size_bytes"):
            v = getattr(info, attr, None)
            if v:
                return int(v)
    except Exception:
        pass
    return 64 << 20  # conservative fallback (v7x-sized)


def _ca_two_pass(x_flat, w1t, w2t, N, C, Cr, H, W, itemsize, hw_tile):
    """HW-tiled two-pass fallback (one extra HBM read of x, small VMEM blocks)."""
    HW = H * W
    if hw_tile is None:
        target = 2 << 20                                   # ~2 MiB x-blocks
        hw_tile = max(128, (target // max(C * itemsize, 1)) // 128 * 128)
    else:
        hw_tile = max(128, (hw_tile // 128) * 128)
    if hw_tile >= HW:
        hw_tile = HW
    num_hw = -(-HW // hw_tile)

    # Pass 1: per-channel spatial sums, (N, 1, C) f32.
    ce1 = pl.CostEstimate(
        flops=N * C * HW, transcendentals=0,
        bytes_accessed=N * C * HW * itemsize + N * C * 4)
    pooled_sum = pl.pallas_call(
        functools.partial(pool_kernel, hw=HW, hw_tile=hw_tile),
        out_shape=jax.ShapeDtypeStruct((N, 1, C), jnp.float32),
        grid_spec=pltpu.PrefetchScalarGridSpec(
            num_scalar_prefetch=0,
            grid=(N, num_hw),
            in_specs=[pl.BlockSpec((1, C, hw_tile), lambda n, t: (n, 0, t))],
            out_specs=pl.BlockSpec((1, 1, C), lambda n, t: (n, 0, 0)),
        ),
        compiler_params=pltpu.CompilerParams(
            dimension_semantics=("parallel", "arbitrary")),
        cost_estimate=ce1,
    )(x_flat)

    # Pass 2: stream x again, recompute the tiny MLP per tile (negligible), scale.
    ce2 = pl.CostEstimate(
        flops=N * C * HW + num_hw * 4 * N * C * Cr,
        transcendentals=num_hw * N * C,
        bytes_accessed=2 * N * C * HW * itemsize + N * C * 4 + 2 * C * Cr * 4)
    out_flat = pl.pallas_call(
        functools.partial(scale_kernel, inv_hw=float(1.0 / HW)),
        out_shape=jax.ShapeDtypeStruct((N, C, HW), x_flat.dtype),
        grid_spec=pltpu.PrefetchScalarGridSpec(
            num_scalar_prefetch=0,
            grid=(N, num_hw),
            in_specs=[
                pl.BlockSpec((1, 1, C), lambda n, t: (n, 0, 0)),
                pl.BlockSpec((C, Cr), lambda n, t: (0, 0)),
                pl.BlockSpec((Cr, C), lambda n, t: (0, 0)),
                pl.BlockSpec((1, C, hw_tile), lambda n, t: (n, 0, t)),
            ],
            out_specs=pl.BlockSpec((1, C, hw_tile), lambda n, t: (n, 0, t)),
        ),
        compiler_params=pltpu.CompilerParams(
            dimension_semantics=("parallel", "parallel")),
        cost_estimate=ce2,
    )(pooled_sum, w1t, w2t, x_flat)

    return out_flat.reshape(N, C, H, W)


def ca_layer(x_nchw, w1, w2, *, vmem_block_budget_bytes=None,
             force_two_pass=False, hw_tile=None):
    """
    x_nchw : (N, C, H, W)   float32 or bfloat16
    w1     : (C//r, C)      first 1x1 conv weight (out, in), bias=False
    w2     : (C, C//r)      second 1x1 conv weight (out, in), bias=False
    """
    N, C, H, W = x_nchw.shape
    Cr = w1.shape[0]
    HW = H * W
    itemsize = jnp.dtype(x_nchw.dtype).itemsize

    # Free reshape (no copy), no padding, no output slice.
    x_flat = x_nchw.reshape(N, C, HW)
    # Weights are tiny: pre-transpose once in the wrapper, keep the MLP in f32.
    w1t = jnp.transpose(w1).astype(jnp.float32)      # (C, Cr)
    w2t = jnp.transpose(w2).astype(jnp.float32)      # (Cr, C)

    # Generation-aware VMEM caps.
    phys = _vmem_physical_bytes()
    vmem_cap = (96 << 20) if phys >= (100 << 20) else (44 << 20)

    weight_bytes = 2 * 2 * C * Cr * 4                # double-buffered f32 weights
    block_bytes_per_b = C * HW * itemsize
    f32_temp_per_b = C * HW * 4 if itemsize < 4 else 0   # possible fused-mul temp (bf16)
    per_b_resident = 4 * block_bytes_per_b + f32_temp_per_b   # 2x in + 2x out (+ temp)

    # Fall back to the HW-tiled two-pass path if even b_tile == 1 cannot fit.
    if force_two_pass or per_b_resident + weight_bytes + (2 << 20) > vmem_cap:
        return _ca_two_pass(x_flat, w1t, w2t, N, C, Cr, H, W, itemsize, hw_tile)

    # ---- single-pass, batch-tiled -----------------------------------------
    if vmem_block_budget_bytes is None:
        vmem_block_budget_bytes = min(24 << 20, vmem_cap)

    budget_tile = max(1, min(N, vmem_block_budget_bytes // per_b_resident))
    # Keep >= ~4 grid steps for DMA/compute overlap and v7x megacore ...
    b_tile = min(budget_tile, max(1, -(-N // 4)))
    # ... unless that would shrink blocks below ~1 MiB (per-step overhead regime).
    if b_tile * block_bytes_per_b < (1 << 20):
        one_mib_tile = -(-(1 << 20) // block_bytes_per_b)
        b_tile = min(budget_tile, max(b_tile, one_mib_tile))
    b_tile = max(1, min(b_tile, N))
    while N % b_tile:                                 # exact tiling: no N padding
        b_tile -= 1
    num_steps = N // b_tile

    resident_bytes = b_tile * per_b_resident + weight_bytes
    cp_kwargs = dict(dimension_semantics=("parallel",))
    if resident_bytes > (12 << 20):                   # above smallest default scoped VMEM
        cp_kwargs["vmem_limit_bytes"] = int(min(resident_bytes + (4 << 20), vmem_cap))

    ce = pl.CostEstimate(
        flops=2 * N * C * HW + 4 * N * C * Cr,
        transcendentals=N * C,
        bytes_accessed=2 * N * C * HW * itemsize + 2 * C * Cr * 4)

    block = (b_tile, C, HW)                           # last two dims = full array dims
    x_index_map = lambda n: (n, 0, 0)

    out_flat = pl.pallas_call(
        functools.partial(ca_kernel, inv_hw=float(1.0 / HW)),
        out_shape=jax.ShapeDtypeStruct((N, C, HW), x_nchw.dtype),
        grid_spec=pltpu.PrefetchScalarGridSpec(
            num_scalar_prefetch=0,
            grid=(num_steps,),
            in_specs=[
                pl.BlockSpec(block, x_index_map),
                pl.BlockSpec((C, Cr), lambda n: (0, 0)),
                pl.BlockSpec((Cr, C), lambda n: (0, 0)),
            ],
            out_specs=pl.BlockSpec(block, x_index_map),
        ),
        compiler_params=pltpu.CompilerParams(**cp_kwargs),
        cost_estimate=ce,
    )(x_flat, w1t, w2t)

    return out_flat.reshape(N, C, H, W)


def ca_layer_ref(x, w1, w2):
    # Pure-JAX reference for verification.
    y = jnp.mean(x, axis=(2, 3))                     # (N, C)
    h = jnp.maximum(y @ w1.T, 0.0)                   # (N, Cr)
    s = jax.nn.sigmoid(h @ w2.T)                     # (N, C)
    return x * s[:, :, None, None]


# TODO(synk): the surrounding Net graph (3x3 convs, PReLU/SELU, bilinear up/down
# sampling, SAM, ORSNet wiring) has no bespoke Pallas kernel here; only the CALayer
# channel-attention used throughout Net's CAB blocks is implemented as a kernel.

if __name__ == "__main__":
    # CALayer as used inside Net's CAB blocks (reduction=4), small test shapes.
    N, C, H, W = 2, 32, 16, 16
    reduction = 4
    Cr = C // reduction

    key = jax.random.PRNGKey(0)
    kx, k1, k2, k3, k4, k5, k6 = jax.random.split(key, 7)
    x = jax.random.normal(kx, (N, C, H, W), dtype=jnp.float32)
    w1 = jax.random.normal(k1, (Cr, C), dtype=jnp.float32) * 0.1
    w2 = jax.random.normal(k2, (C, Cr), dtype=jnp.float32) * 0.1

    # float32 path (matches the PyTorch module numerics)
    out = jax.block_until_ready(ca_layer(x, w1, w2))
    ref = ca_layer_ref(x, w1, w2)
    assert out.shape == (N, C, H, W)
    assert jnp.allclose(out, ref, atol=1e-5, rtol=1e-5), "f32 mismatch vs reference"

    # bfloat16 I/O path (pooled / MLP / multiply still f32)
    xb = x.astype(jnp.bfloat16)
    out_b = jax.block_until_ready(ca_layer(xb, w1, w2))
    ref_b = ca_layer_ref(xb.astype(jnp.float32), w1, w2)
    assert out_b.dtype == jnp.bfloat16
    assert jnp.allclose(out_b.astype(jnp.float32), ref_b, atol=6e-2, rtol=6e-2), \
        "bf16 mismatch vs reference"

    # Unaligned HW (HW % 128 != 0): full-extent block, masked-tail store, no pad/slice.
    N2, C2, H2, W2 = 3, 32, 10, 30
    x2 = jax.random.normal(k3, (N2, C2, H2, W2), dtype=jnp.float32)
    out2 = jax.block_until_ready(ca_layer(x2, w1, w2))
    ref2 = ca_layer_ref(x2, w1, w2)
    assert jnp.allclose(out2, ref2, atol=1e-5, rtol=1e-5), "unaligned-HW mismatch"

    # HW-tiled two-pass fallback (forced at a small shape to exercise the path).
    N3, C3, H3, W3 = 2, 16, 10, 30
    Cr3 = C3 // reduction
    x3 = jax.random.normal(k4, (N3, C3, H3, W3), dtype=jnp.float32)
    w13 = jax.random.normal(k5, (Cr3, C3), dtype=jnp.float32) * 0.1
    w23 = jax.random.normal(k6, (C3, Cr3), dtype=jnp.float32) * 0.1
    out3 = jax.block_until_ready(
        ca_layer(x3, w13, w23, force_two_pass=True, hw_tile=128))
    ref3 = ca_layer_ref(x3, w13, w23)
    assert jnp.allclose(out3, ref3, atol=1e-5, rtol=1e-5), "two-pass mismatch"

    print("KERNEL_OK")
</pallas_src>

<mosaic_0001>
module attributes {stable_mosaic.version = 11 : i64} {
  func.func @ca_kernel(%arg0: i32, %arg1: memref<2x32x256xf32, #tpu.memory_space<vmem>>, %arg2: memref<32x8xf32, #tpu.memory_space<vmem>>, %arg3: memref<8x32xf32, #tpu.memory_space<vmem>>, %arg4: memref<2x32x256xf32, #tpu.memory_space<vmem>>) attributes {dimension_semantics = [#tpu.dimension_semantics<parallel>], iteration_bounds = array<i64: 1>, scalar_prefetch = 0 : i64, scratch_operands = 0 : i64, tpu.core_type = #tpu.core_type<tc>, window_params = [{transform_indices = @transform_0, window_bounds = array<i64: 2, 32, 256>}, {pipeline_mode = #tpu.pipeline_mode<synchronous>, transform_indices = @transform_1, window_bounds = array<i64: 32, 8>}, {pipeline_mode = #tpu.pipeline_mode<synchronous>, transform_indices = @transform_2, window_bounds = array<i64: 8, 32>}, {transform_indices = @transform_3, window_bounds = array<i64: 2, 32, 256>}]} {
    %c0 = arith.constant 0 : index
    %c0_0 = arith.constant 0 : index
    %c0_1 = arith.constant 0 : index
    %0 = vector.load %arg1[%c0, %c0_0, %c0_1] : memref<2x32x256xf32, #tpu.memory_space<vmem>>, vector<2x32x256xf32>
    %cst = arith.constant dense<0.000000e+00> : vector<2x32xf32>
    %1 = vector.multi_reduction <add>, %0, %cst [2] : vector<2x32x256xf32> to vector<2x32xf32>
    %cst_2 = arith.constant 3.906250e-03 : f32
    %2 = vector.broadcast %cst_2 : f32 to vector<2x32xf32>
    %3 = arith.mulf %1, %2 : vector<2x32xf32>
    %c0_3 = arith.constant 0 : index
    %c0_4 = arith.constant 0 : index
    %4 = vector.load %arg2[%c0_3, %c0_4] : memref<32x8xf32, #tpu.memory_space<vmem>>, vector<32x8xf32>
    %cst_5 = arith.constant dense<0.000000e+00> : vector<2x8xf32>
    %5 = tpu.matmul %3, %4, %cst_5 {dimension_numbers = #tpu.dot_dimension_numbers<[1], [0], [0], [1], [0, 0, 1, 1], [], []>} : vector<2x32xf32>, vector<32x8xf32>, vector<2x8xf32> -> vector<2x8xf32>
    %cst_6 = arith.constant 0.000000e+00 : f32
    %6 = vector.broadcast %cst_6 : f32 to vector<2x8xf32>
    %7 = arith.maximumf %5, %6 : vector<2x8xf32>
    %c0_7 = arith.constant 0 : index
    %c0_8 = arith.constant 0 : index
    %8 = vector.load %arg3[%c0_7, %c0_8] : memref<8x32xf32, #tpu.memory_space<vmem>>, vector<8x32xf32>
    %cst_9 = arith.constant dense<0.000000e+00> : vector<2x32xf32>
    %9 = tpu.matmul %7, %8, %cst_9 {dimension_numbers = #tpu.dot_dimension_numbers<[1], [0], [0], [1], [0, 0, 1, 1], [], []>} : vector<2x8xf32>, vector<8x32xf32>, vector<2x32xf32> -> vector<2x32xf32>
    %10 = arith.negf %9 : vector<2x32xf32>
    %11 = math.exp %10 : vector<2x32xf32>
    %cst_10 = arith.constant 1.000000e+00 : f32
    %12 = vector.broadcast %cst_10 : f32 to vector<2x32xf32>
    %13 = arith.addf %12, %11 : vector<2x32xf32>
    %14 = arith.divf %12, %13 : vector<2x32xf32>
    %15 = vector.shape_cast %14 : vector<2x32xf32> to vector<2x32x1xf32>
    %16 = vector.broadcast %15 : vector<2x32x1xf32> to vector<2x32x256xf32>
    %17 = arith.mulf %0, %16 : vector<2x32x256xf32>
    %c0_11 = arith.constant 0 : index
    %c0_12 = arith.constant 0 : index
    %c0_13 = arith.constant 0 : index
    %18 = vector.load %arg4[%c0_11, %c0_12, %c0_13] : memref<2x32x256xf32, #tpu.memory_space<vmem>>, vector<2x32x256xf32>
    tpu.vector_store %arg4[%c0_11, %c0_12, %c0_13], %17 {strides = array<i32>} : memref<2x32x256xf32, #tpu.memory_space<vmem>>, vector<2x32x256xf32>,
    return
  }
  func.func @transform_0(%arg0: i32) -> (i32, i32, i32) {
    %c0_i32 = arith.constant 0 : i32
    %c0_i32_0 = arith.constant 0 : i32
    %c0_i32_1 = arith.constant 0 : i32
    return %arg0, %c0_i32, %c0_i32_0 : i32, i32, i32
  }
  func.func @transform_1(%arg0: i32) -> (i32, i32) {
    %c0_i32 = arith.constant 0 : i32
    %c0_i32_0 = arith.constant 0 : i32
    %c0_i32_1 = arith.constant 0 : i32
    return %c0_i32, %c0_i32_0 : i32, i32
  }
  func.func @transform_2(%arg0: i32) -> (i32, i32) {
    %c0_i32 = arith.constant 0 : i32
    %c0_i32_0 = arith.constant 0 : i32
    %c0_i32_1 = arith.constant 0 : i32
    return %c0_i32, %c0_i32_0 : i32, i32
  }
  func.func @transform_3(%arg0: i32) -> (i32, i32, i32) {
    %c0_i32 = arith.constant 0 : i32
    %c0_i32_0 = arith.constant 0 : i32
    %c0_i32_1 = arith.constant 0 : i32
    return %arg0, %c0_i32, %c0_i32_0 : i32, i32, i32
  }
}

</mosaic_0001>

<bundles_post_ra>
// kernel: tpu_custom_call.1
= control target key start
LH: loop header
LB: loop body
LE: loop exit
PB: predicated region body
PF: predicated region fallthrough
CT: control target
= control target key end

     0   :  { %8 = vsyncpa [#allocation3], 0  ;;  %s471_s0 = inlined_call_operand.hbm [shape: f32[2,32,256], index: 0, kind: input, shape index: {}]   ;;  %s472_s1 = inlined_call_operand.vmem [shape: f32[32,8], index: 1, kind: input, shape index: {}]   ;;  %s473_s2 = inlined_call_operand.vmem [shape: f32[8,32], index: 2, kind: input, shape index: {}]   ;;  %s474_s3 = inlined_call_operand.hbm [shape: f32[2,32,256], index: 3, kind: output, shape index: {}]  }
   0x1   :  { %9 = vsyncpa [#allocation4], 0  ;;  %s14_s14 = sshll.u32 %s471_s0, 4  ;;  %s356_s15 = smov [#allocation2]   ;;  %s15_s14 = int_to_ptr.hbm [resolvable:$true] %s14_s14 }
   0x2   :  { %s16_s16 = sshll.u32 %s356_s15, 4  ;;  %s357_s17 = smov 256   ;;  %s17_s16 = int_to_ptr.vmem [resolvable:$true] %s16_s16 }
   0x3   :  { %s358_s18 = smov 16  }
   0x4   :  { %22 = dma.hbm_to_vmem [thread:$0]  %s15_s14, 2048, %s17_s16, [#allocation3], %s357_s17, %s357_s17, %s358_s18  }
   0x5   :  { %352 = dma.done.wait [#allocation3], 2048  }
   0x6   :  { %353 = vsyncadd [#allocation3], 4294965248  ;;  %v386_v0 = vld [vmem:[#allocation2 + $0x40] sm:$0xff]  ;;  %v388_v1 = vld [vmem:[#allocation2 + $0x48] sm:$0xff]  ;;  %v91_v31 = vlaneseq  ;;  %vm96_vm0 = vcmask 130112   ;;  %vm100_vm1 = vcmask 195712  }
   0x7   :  { %v390_v2 = vld [vmem:[#allocation2] sm:$0xff]  ;;  %v59_v3 = vadd.f32 %v388_v1, %v386_v0  ;;  %v394_v4 = vld [vmem:[#allocation2 + $0x8] sm:$0xff]  ;;  %v404_v9 = vld [vmem:[#allocation2 + $0x50] sm:$0xff]  ;;  %vm104_vm2 = vcmask 261312   ;;  %vm113_vm3 = vcmask 1041409   ;;  %vm115_vm4 = vcmask 261120  }
   0x8   :  { %v396_v5 = vld [vmem:[#allocation2 + $0x20] sm:$0xff]  ;;  %v398_v6 = vld [vmem:[#allocation2 + $0x28] sm:$0xff]  ;;  %v47_v7 = vadd.f32 %v394_v4, %v390_v2  ;;  %v406_v10 = vld [vmem:[#allocation2 + $0x58] sm:$0xff]  ;;  %v92_v32 = vand.u32 127, %v91_v31  ;;  %vm140_vm5 = vcmask 64512   ;;  %s271_s30 = sshll.u32 %s474_s3, 4  ;;  %s272_s30 = int_to_ptr.hbm [resolvable:$true] %s271_s30 }
   0x9   :  { %v53_v8 = vadd.f32 %v398_v6, %v396_v5  ;;  %60 = vadd.xlane.f32.xlu1 %v59_v3  ;;  %v408_v11 = vld [vmem:[#allocation2 + $0x10] sm:$0xff]  ;;  %v410_v12 = vld [vmem:[#allocation2 + $0x18] sm:$0xff]  ;;  %v412_v13 = vld [vmem:[#allocation2 + $0x60] sm:$0xff]  ;;  %v62_v15 = vadd.f32 %v406_v10, %v404_v9 }
   0xa   :  { %48 = vadd.xlane.f32.xlu0 %v47_v7  ;;  %v414_v14 = vld [vmem:[#allocation2 + $0x68] sm:$0xff]  ;;  %v50_v16 = vadd.f32 %v410_v12, %v408_v11  ;;  %v422_v18 = vld [vmem:[#allocation2 + $0x70] sm:$0xff]  ;;  %v424_v19 = vld [vmem:[#allocation2 + $0x78] sm:$0xff]  ;;  %v94_v34 = vadd.s32 4294967288, %v92_v32  ;;  %v98_v43 = vadd.s32 4294967280, %v92_v32  ;;  %v102_v47 = vadd.s32 4294967272, %v92_v32 }
   0xb   :  { %54 = vadd.xlane.f32.xlu2 %v53_v8  ;;  %v65_v17 = vadd.f32 %v414_v14, %v412_v13  ;;  %v426_v20 = vld [vmem:[#allocation2 + $0x30] sm:$0xff]  ;;  %v428_v21 = vld [vmem:[#allocation2 + $0x38] sm:$0xff]  ;;  %v68_v22 = vadd.f32 %v424_v19, %v422_v18  ;;  %v80_v26 = vld [vmem:[%s472_s1 + $0x8] sm:$0xff] }
   0xc   :  { %v56_v23 = vadd.f32 %v428_v21, %v426_v20  ;;  %v82_v24 = vld [vmem:[%s472_s1 + $0x18] sm:$0xff]  ;;  %v81_v25 = vld [vmem:[%s472_s1 + $0x10] sm:$0xff]  ;;  %v79_v27 = vld [vmem:[%s472_s1] sm:$0xff] }
   0xd   :  { %130 = vmatpush.msra.mxu0 %v82_v24  ;;  %v139_v3 = vld [vmem:[%s473_s2] sm:$0xff]  ;;  %s359_s2 = smov [#allocation5]  }
   0xe   :  { %159 = vmatpush.msra.mxu1 %v139_v3  ;;  %s269_s27 = sshll.u32 %s359_s2, 4  ;;  %s270_s27 = int_to_ptr.vmem [resolvable:$true] %s269_s27 }
   0xf   :  { %131 = vmatpush.msra.mxu0 %v81_v25 }
  0x11   :  { %63 = vadd.xlane.f32.xlu1 %v62_v15  ;;  %132 = vmatpush.msra.mxu0 %v80_v26  ;;  %v185_v15 = vshrl.u32 %v91_v31, 7 }
  0x12   :  { %51 = vadd.xlane.f32.xlu0 %v50_v16 }
  0x13   :  { %66 = vadd.xlane.f32.xlu2 %v65_v17  ;;  %133 = vmatpush.msra.mxu0 %v79_v27  ;;  %v198_v16 = vadd.s32 16, %v185_v15  ;;  %v192_v17 = vadd.s32 8, %v185_v15 }
  0x14   :  { %291 = vset.pattern.permute.xlu2 %v185_v15 }
  0x15   :  { %293 = vset.pattern.permute.xlu1 %v198_v16  ;;  %292 = vset.pattern.permute.xlu0 %v192_v17 }
  0x19   :  { %69 = vadd.xlane.f32.xlu1 %v68_v22 }
  0x1a   :  { %57 = vadd.xlane.f32.xlu0 %v56_v23 }
  0x7c   :  { %v61_v28 = vpop.xlane.xlu1 %60 }
  0x7d   :  { %v49_v29 = vpop.xlane.xlu0 %48  ;;  %v75_v39 = vmul.f32 0.00390625, %v61_v28 }
  0x7e   :  { %v55_v30 = vpop.xlane.xlu2 %54  ;;  %v71_v40 = vmul.f32 0.00390625, %v49_v29 }
  0x7f   :  { %v106_v45 = vperm.slane %v75_v39, %v92_v32  ;;  %v73_v46 = vmul.f32 0.00390625, %v55_v30 }
  0x80   :  { %v93_v48 = vperm.slane %v71_v40, %v92_v32 }
  0x81   :  { %v99_v56 = vperm.slane %v73_v46, %v98_v43 }
  0x84   :  { %v64_v33 = vpop.xlane.xlu1 %63 }
  0x85   :  { %v76_v35 = vmul.f32 0.00390625, %v64_v33  ;;  %v52_v36 = vpop.xlane.xlu0 %51 }
  0x86   :  { %v67_v37 = vpop.xlane.xlu2 %66  ;;  %v72_v38 = vmul.f32 0.00390625, %v52_v36 }
  0x87   :  { %v77_v41 = vmul.f32 0.00390625, %v67_v37  ;;  %v107_v42 = vperm.slane %v76_v35, %v94_v34  ;;  %v204_v37 = vadd.s32 24, %v185_v15 }
  0x88   :  { %v95_v44 = vperm.slane %v72_v38, %v94_v34 }
  0x89   :  { %v109_v49 = vperm.slane %v77_v41, %v98_v43  ;;  %v108_v51 = vsel %vm96_vm0, %v107_v42, %v106_v45 }
  0x8a   :  { %v97_v54 = vsel %vm96_vm0, %v95_v44, %v93_v48 }
  0x8b   :  { %v110_v59 = vsel %vm100_vm1, %v109_v49, %v108_v51  ;;  %v101_v60 = vsel %vm100_vm1, %v99_v56, %v97_v54 }
  0x8c   :  { %v70_v50 = vpop.xlane.xlu1 %69 }
  0x8d   :  { %v78_v52 = vmul.f32 0.00390625, %v70_v50  ;;  %v58_v53 = vpop.xlane.xlu0 %57 }
  0x8e   :  { %v74_v55 = vmul.f32 0.00390625, %v58_v53 }
  0x8f   :  { %v111_v57 = vperm.slane %v78_v52, %v102_v47 }
  0x90   :  { %v103_v58 = vperm.slane %v74_v55, %v102_v47 }
  0x91   :  { %v112_v61 = vsel %vm104_vm2, %v111_v57, %v110_v59 }
  0x92   :  { %v105_v62 = vsel %vm104_vm2, %v103_v58, %v101_v60 }
  0x93   :  { %v114_v63 = vsel %vm113_vm3, %v112_v61, %v105_v62 }
  0x94   :  { %284 = vmatmul.msk.f32.vlgmr.msra.gmra.mxu0 %vm115_vm4, %v114_v63 }
 0x111   :  { %v135_v7 = vpop.f32.mrf.mxu0 }
 0x112   :  { %v138_v8 = vmax.f32 %v135_v7, 0.0 }
 0x114   :  { %285 = vmatmul.msk.f32.vlgmr.msra.gmra.mxu1 %vm140_vm5, %v138_v8 }
 0x191   :  { %v161_v22 = vpop.f32.mrf.mxu1 }
 0x192   :  { %v286_v23 = vmul.f32 -1.442695, %v161_v22 }
 0x194   :  { %300 = vpow2.f32 %v286_v23 }
 0x19a   :  { %v301_v24 = vpop.eup %300 }
 0x19b   :  { %v167_v25 = vadd.f32 1.0, %v301_v24 }
 0x19d   :  { %302 = vrcp.f32 %v167_v25  ;;  %v179_v29 = vand.u32 2147483648, %v167_v25  ;;  %v177_v32 = vand.u32 2147483647, %v167_v25  ;;  %vm173_vm7 = vweird.f32 %v167_v25 }
 0x19f   :  { %v180_v31 = vor.u32 1.1754944e-38, %v179_v29  ;;  %vm178_vm9 = vcmp.eq.f32.partialorder %v177_v32, 8.507059e+37 }
 0x1a3   :  { %v303_v26 = vpop.eup %302 }
 0x1a4   :  { %v169_v27 = vmul.f32 %v303_v26, %v167_v25  ;;  %vm174_vm6 = vweird.f32 %v303_v26 }
 0x1a5   :  { %vm175_vm8 = vmor %vm173_vm7, %vm174_vm6 }
 0x1a6   :  { %v170_v28 = vsub.f32 1.0, %v169_v27 }
 0x1a8   :  { %v171_v30 = vmul.f32 %v303_v26, %v170_v28 }
 0x1aa   :  { %v172_v33 = vadd.f32 %v303_v26, %v171_v30 }
 0x1ac   :  { %v176_v34 = vsel %vm175_vm8, %v303_v26, %v172_v33 }
 0x1ad   :  { %v181_v35 = vsel %vm178_vm9, %v180_v31, %v176_v34 }
 0x1ae   :  { %v183_v36 = vperm.slane %v181_v35, 0  ;;  %v208_v38 = vperm.slane %v181_v35, 1 }
 0x1b0   :  { %200 = vperm.xlu1 %293, %v183_v36   ;;  %194 = vperm.xlu0 %292, %v183_v36  }
 0x1b1   :  { %188 = vperm.xlu2 %291, %v183_v36  }
 0x1b8   :  { %296 = vset.pattern.permute.xlu1 %v192_v17  ;;  %299 = vset.pattern.permute.xlu0 %v204_v37 }
 0x1b9   :  { %294 = vset.pattern.permute.xlu2 %v204_v37 }
 0x1c0   :  { %219 = vperm.xlu1 %296, %v208_v38  }
 0x1c1   :  { %206 = vperm.xlu2 %294, %v183_v36  }
 0x1c8   :  { %298 = vset.pattern.permute.xlu1 %v204_v37 }
 0x1c9   :  { %295 = vset.pattern.permute.xlu2 %v185_v15 }
 0x1d0   :  { %231 = vperm.xlu1 %298, %v208_v38  }
 0x1d1   :  { %213 = vperm.xlu2 %295, %v208_v38  }
 0x1d9   :  { %297 = vset.pattern.permute.xlu2 %v198_v16 }
 0x1e1   :  { %225 = vperm.xlu2 %297, %v208_v38  }
 0x20b   :  { %v189_v39 = vpop.permute.xlu2 %188 }
 0x20c   :  { %v233_v40 = vmul.f32 %v189_v39, %v390_v2  ;;  %v234_v41 = vmul.f32 %v189_v39, %v394_v4 }
 0x20e   :  { %249 = vst [vmem:[#allocation5] sm:$0xff] %v233_v40 }
 0x20f   :  { %250 = vst [vmem:[#allocation5 + $0x8] sm:$0xff] %v234_v41 }
 0x21b   :  { %v207_v42 = vpop.permute.xlu2 %206 }
 0x21c   :  { %v239_v43 = vmul.f32 %v207_v42, %v426_v20  ;;  %v240_v44 = vmul.f32 %v207_v42, %v428_v21 }
 0x21e   :  { %255 = vst [vmem:[#allocation5 + $0x30] sm:$0xff] %v239_v43 }
 0x21f   :  { %256 = vst [vmem:[#allocation5 + $0x38] sm:$0xff] %v240_v44 }
 0x222   :  { %v201_v45 = vpop.permute.xlu1 %200  ;;  %v195_v46 = vpop.permute.xlu0 %194 }
 0x223   :  { %v237_v47 = vmul.f32 %v201_v45, %v396_v5  ;;  %v238_v48 = vmul.f32 %v201_v45, %v398_v6  ;;  %v235_v49 = vmul.f32 %v195_v46, %v408_v11  ;;  %v236_v2 = vmul.f32 %v195_v46, %v410_v12 }
 0x225   :  { %253 = vst [vmem:[#allocation5 + $0x20] sm:$0xff] %v237_v47 }
 0x226   :  { %254 = vst [vmem:[#allocation5 + $0x28] sm:$0xff] %v238_v48 }
 0x227   :  { %251 = vst [vmem:[#allocation5 + $0x10] sm:$0xff] %v235_v49 }
 0x228   :  { %252 = vst [vmem:[#allocation5 + $0x18] sm:$0xff] %v236_v2 }
 0x22b   :  { %v214_v4 = vpop.permute.xlu2 %213 }
 0x22c   :  { %v241_v20 = vmul.f32 %v214_v4, %v386_v0  ;;  %v242_v21 = vmul.f32 %v214_v4, %v388_v1 }
 0x22e   :  { %257 = vst [vmem:[#allocation5 + $0x40] sm:$0xff] %v241_v20 }
 0x22f   :  { %258 = vst [vmem:[#allocation5 + $0x48] sm:$0xff] %v242_v21 }
 0x232   :  { %v220_v50 = vpop.permute.xlu1 %219 }
 0x233   :  { %v243_v5 = vmul.f32 %v220_v50, %v404_v9  ;;  %v244_v6 = vmul.f32 %v220_v50, %v406_v10 }
 0x235   :  { %259 = vst [vmem:[#allocation5 + $0x50] sm:$0xff] %v243_v5 }
 0x236   :  { %260 = vst [vmem:[#allocation5 + $0x58] sm:$0xff] %v244_v6 }
 0x23b   :  { %v226_v11 = vpop.permute.xlu2 %225 }
 0x23c   :  { %v245_v12 = vmul.f32 %v226_v11, %v412_v13  ;;  %v246_v51 = vmul.f32 %v226_v11, %v414_v14 }
 0x23e   :  { %261 = vst [vmem:[#allocation5 + $0x60] sm:$0xff] %v245_v12 }
 0x23f   :  { %262 = vst [vmem:[#allocation5 + $0x68] sm:$0xff] %v246_v51 }
 0x242   :  { %v232_v0 = vpop.permute.xlu1 %231 }
 0x243   :  { %v247_v1 = vmul.f32 %v232_v0, %v422_v18  ;;  %v248_v9 = vmul.f32 %v232_v0, %v424_v19 }
 0x245   :  { %263 = vst [vmem:[#allocation5 + $0x70] sm:$0xff] %v247_v1 }
 0x246   :  { %264 = vst [vmem:[#allocation5 + $0x78] sm:$0xff] %v248_v9 }
 0x247   :  { %277 = dma.vmem_to_hbm [thread:$0]  %s270_s27, 2048, %s272_s30, [#allocation4], %s357_s17, %s357_s17, %s358_s18  }
 0x248   :  { %354 = dma.done.wait [#allocation4], 2048  }
 0x249   :  { %355 = vsyncadd [#allocation4], 4294965248 }
 0x24a   :  { %282 = vsyncpa [#allocation3], 1 }
 0x24b   :  { %283 = vsyncpa [#allocation4], 1 }

</bundles_post_ra>
